<compile_context>
chip_gen: v7x
topology: tpu7x:2x2x1
jax: 0.10.0
libtpu: 0.0.40
codegen_flags: <defaults>
</compile_context>

<pallas_src>
import functools

import jax
import jax.numpy as jnp
from jax.experimental import pallas as pl
from jax.experimental.pallas import tpu as pltpu


def _layer_norm_kernel(x_ref, g_ref, b_ref, o_ref, *, eps: float, d: int):
    """Per-row LayerNorm over the last axis.

    x_ref: (block_rows, D) tile; g_ref/b_ref: (1, D) VMEM-resident affine params.
    """
    x = x_ref[...].astype(jnp.float32)
    mean = jnp.mean(x, axis=-1, keepdims=True)
    centered = x - mean
    # torch.Tensor.std is the unbiased estimator: divide by (D - 1).
    inv_nm1 = jnp.float32(1.0 / float(max(d - 1, 1)))
    var = jnp.sum(centered * centered, axis=-1, keepdims=True) * inv_nm1
    std = jnp.sqrt(var)
    # One reciprocal per row, broadcast into a multiply (instead of D divides).
    inv = 1.0 / (std + jnp.float32(eps))
    gamma = g_ref[...].astype(jnp.float32)
    beta = b_ref[...].astype(jnp.float32)
    y = gamma * (centered * inv) + beta
    o_ref[...] = y.astype(o_ref.dtype)


def layer_norm_forward(x: jnp.ndarray,
                       gamma: jnp.ndarray,
                       beta: jnp.ndarray,
                       eps: float = 1e-6,
                       block_rows: int | None = None) -> jnp.ndarray:
    """LayerNorm forward: gamma * (x - mean) / (std + eps) + beta over the last axis."""
    orig_shape = x.shape
    d = int(orig_shape[-1])
    n = 1
    for s in orig_shape[:-1]:
        n *= int(s)

    x2 = x.reshape(n, d)          # lane-dense 2-D slab: feature axis last
    g2 = gamma.reshape(1, d)
    b2 = beta.reshape(1, d)

    # ~2 MiB of f32 per input tile; each row is normalized independently, so
    # tiling the row axis loses nothing. For tiny problems this is one block.
    if block_rows is None:
        block_rows = max(1, (2 << 20) // (4 * d))
    block_rows = min(block_rows, n)
    if block_rows != n:
        block_rows = max(8, (block_rows // 8) * 8)   # keep sublane-aligned tiles

    num_blocks = pl.cdiv(n, block_rows)
    n_pad = num_blocks * block_rows
    if n_pad != n:
        # Pad rows so every tile is full; padded (all-zero) rows normalize to 0
        # without NaNs and are sliced off below.
        x2 = jnp.pad(x2, ((0, n_pad - n), (0, 0)))

    kernel = functools.partial(_layer_norm_kernel, eps=float(eps), d=d)

    out = pl.pallas_call(
        kernel,
        out_shape=jax.ShapeDtypeStruct((n_pad, d), x.dtype),
        grid=(num_blocks,),
        in_specs=[
            pl.BlockSpec((block_rows, d), lambda i: (i, 0)),   # x tile
            pl.BlockSpec((1, d), lambda i: (0, 0)),            # gamma (resident)
            pl.BlockSpec((1, d), lambda i: (0, 0)),            # beta  (resident)
        ],
        out_specs=pl.BlockSpec((block_rows, d), lambda i: (i, 0)),
        compiler_params=pltpu.CompilerParams(
            dimension_semantics=("parallel",),
            vmem_limit_bytes=64 << 20,
        ),
    )(x2, g2, b2)

    if n_pad != n:
        out = out[:n]
    return out.reshape(orig_shape)


def _layer_norm_ref(x, gamma, beta, eps):
    """Pure-JAX reference with identical (torch) semantics."""
    mean = jnp.mean(x, axis=-1, keepdims=True)
    var = jnp.sum((x - mean) ** 2, axis=-1, keepdims=True) / (x.shape[-1] - 1)
    std = jnp.sqrt(var)
    return gamma * (x - mean) / (std + eps) + beta


if __name__ == "__main__":
    # Small shapes consistent with the module: (batch, seq, feature_size).
    # feature_size=128 keeps loads/stores lane-dense (multiple of 128).
    B, S, D = 2, 8, 128
    eps = 1e-6

    key = jax.random.PRNGKey(0)
    kx, kg, kb = jax.random.split(key, 3)
    x = jax.random.normal(kx, (B, S, D), dtype=jnp.float32)

    # Module-default parameters: a_2 = ones, b_2 = zeros.
    gamma = jnp.ones((D,), dtype=jnp.float32)
    beta = jnp.zeros((D,), dtype=jnp.float32)

    y = jax.block_until_ready(layer_norm_forward(x, gamma, beta, eps))
    y_ref = _layer_norm_ref(x, gamma, beta, eps)
    assert y.shape == (B, S, D)
    assert jnp.allclose(y, y_ref, atol=1e-5, rtol=1e-5), "mismatch vs LayerNorm reference"

    # Also exercise non-trivial affine parameters.
    gamma2 = jax.random.normal(kg, (D,), dtype=jnp.float32)
    beta2 = jax.random.normal(kb, (D,), dtype=jnp.float32)
    y2 = jax.block_until_ready(layer_norm_forward(x, gamma2, beta2, eps))
    y2_ref = _layer_norm_ref(x, gamma2, beta2, eps)
    assert jnp.allclose(y2, y2_ref, atol=1e-5, rtol=1e-5), "mismatch with affine params"

    print("KERNEL_OK")
</pallas_src>

<mosaic_0001>
module attributes {stable_mosaic.version = 11 : i64} {
  func.func @_layer_norm_kernel(%arg0: i32, %arg1: memref<16x128xf32, #tpu.memory_space<vmem>>, %arg2: memref<1x128xf32, #tpu.memory_space<vmem>>, %arg3: memref<1x128xf32, #tpu.memory_space<vmem>>, %arg4: memref<16x128xf32, #tpu.memory_space<vmem>>) attributes {dimension_semantics = [#tpu.dimension_semantics<parallel>], iteration_bounds = array<i64: 1>, scalar_prefetch = 0 : i64, scratch_operands = 0 : i64, tpu.core_type = #tpu.core_type<tc>, window_params = [{transform_indices = @transform_0, window_bounds = array<i64: 16, 128>}, {pipeline_mode = #tpu.pipeline_mode<synchronous>, transform_indices = @transform_1, window_bounds = array<i64: 1, 128>}, {pipeline_mode = #tpu.pipeline_mode<synchronous>, transform_indices = @transform_2, window_bounds = array<i64: 1, 128>}, {transform_indices = @transform_3, window_bounds = array<i64: 16, 128>}]} {
    %c0 = arith.constant 0 : index
    %c0_0 = arith.constant 0 : index
    %0 = vector.load %arg1[%c0, %c0_0] : memref<16x128xf32, #tpu.memory_space<vmem>>, vector<16x128xf32>
    %cst = arith.constant dense<0.000000e+00> : vector<16xf32>
    %1 = vector.multi_reduction <add>, %0, %cst [1] : vector<16x128xf32> to vector<16xf32>
    %2 = vector.shape_cast %1 : vector<16xf32> to vector<16x1xf32>
    %cst_1 = arith.constant 1.280000e+02 : f32
    %3 = vector.broadcast %cst_1 : f32 to vector<16x1xf32>
    %4 = arith.divf %2, %3 : vector<16x1xf32>
    %5 = vector.broadcast %4 : vector<16x1xf32> to vector<16x128xf32>
    %6 = arith.subf %0, %5 : vector<16x128xf32>
    %7 = arith.mulf %6, %6 : vector<16x128xf32>
    %cst_2 = arith.constant dense<0.000000e+00> : vector<16xf32>
    %8 = vector.multi_reduction <add>, %7, %cst_2 [1] : vector<16x128xf32> to vector<16xf32>
    %9 = vector.shape_cast %8 : vector<16xf32> to vector<16x1xf32>
    %cst_3 = arith.constant 0.00787401571 : f32
    %10 = vector.broadcast %cst_3 : f32 to vector<16x1xf32>
    %11 = arith.mulf %9, %10 : vector<16x1xf32>
    %12 = math.sqrt %11 : vector<16x1xf32>
    %cst_4 = arith.constant 9.99999997E-7 : f32
    %13 = vector.broadcast %cst_4 : f32 to vector<16x1xf32>
    %14 = arith.addf %12, %13 : vector<16x1xf32>
    %cst_5 = arith.constant 1.000000e+00 : f32
    %15 = vector.broadcast %cst_5 : f32 to vector<16x1xf32>
    %16 = arith.divf %15, %14 : vector<16x1xf32>
    %c0_6 = arith.constant 0 : index
    %c0_7 = arith.constant 0 : index
    %17 = vector.load %arg2[%c0_6, %c0_7] : memref<1x128xf32, #tpu.memory_space<vmem>>, vector<1x128xf32>
    %c0_8 = arith.constant 0 : index
    %c0_9 = arith.constant 0 : index
    %18 = vector.load %arg3[%c0_8, %c0_9] : memref<1x128xf32, #tpu.memory_space<vmem>>, vector<1x128xf32>
    %19 = vector.broadcast %16 : vector<16x1xf32> to vector<16x128xf32>
    %20 = arith.mulf %6, %19 : vector<16x128xf32>
    %21 = vector.broadcast %17 : vector<1x128xf32> to vector<16x128xf32>
    %22 = arith.mulf %21, %20 : vector<16x128xf32>
    %23 = vector.broadcast %18 : vector<1x128xf32> to vector<16x128xf32>
    %24 = arith.addf %22, %23 : vector<16x128xf32>
    %c0_10 = arith.constant 0 : index
    %c0_11 = arith.constant 0 : index
    %25 = vector.load %arg4[%c0_10, %c0_11] : memref<16x128xf32, #tpu.memory_space<vmem>>, vector<16x128xf32>
    tpu.vector_store %arg4[%c0_10, %c0_11], %24 {strides = array<i32>} : memref<16x128xf32, #tpu.memory_space<vmem>>, vector<16x128xf32>,
    return
  }
  func.func @transform_0(%arg0: i32) -> (i32, i32) {
    %c0_i32 = arith.constant 0 : i32
    %c0_i32_0 = arith.constant 0 : i32
    return %arg0, %c0_i32 : i32, i32
  }
  func.func @transform_1(%arg0: i32) -> (i32, i32) {
    %c0_i32 = arith.constant 0 : i32
    %c0_i32_0 = arith.constant 0 : i32
    %c0_i32_1 = arith.constant 0 : i32
    return %c0_i32, %c0_i32_0 : i32, i32
  }
  func.func @transform_2(%arg0: i32) -> (i32, i32) {
    %c0_i32 = arith.constant 0 : i32
    %c0_i32_0 = arith.constant 0 : i32
    %c0_i32_1 = arith.constant 0 : i32
    return %c0_i32, %c0_i32_0 : i32, i32
  }
  func.func @transform_3(%arg0: i32) -> (i32, i32) {
    %c0_i32 = arith.constant 0 : i32
    %c0_i32_0 = arith.constant 0 : i32
    return %arg0, %c0_i32 : i32, i32
  }
}

</mosaic_0001>

<bundles_post_ra>
// kernel: tpu_custom_call.1
= control target key start
LH: loop header
LB: loop body
LE: loop exit
PB: predicated region body
PF: predicated region fallthrough
CT: control target
= control target key end

     0   :  { %8 = vsyncpa [#allocation3], 0  ;;  %s328_s0 = inlined_call_operand.hbm [shape: f32[16,128], index: 0, kind: input, shape index: {}]   ;;  %s329_s1 = inlined_call_operand.hbm [shape: f32[1,128], index: 1, kind: input, shape index: {}]   ;;  %s330_s2 = inlined_call_operand.hbm [shape: f32[1,128], index: 2, kind: input, shape index: {}]   ;;  %s331_s3 = inlined_call_operand.hbm [shape: f32[16,128], index: 3, kind: output, shape index: {}]  }
   0x1   :  { %9 = vsyncpa [#allocation6], 0 }
   0x2   :  { %10 = vsyncpa [#allocation4], 0  ;;  %s241_s12 = smov [#allocation5]   ;;  %s242_s14 = smov [#allocation2]  }
   0x3   :  { %s29_s13 = sshll.u32 %s241_s12, 4  ;;  %s16_s15 = sshll.u32 %s242_s14, 4  ;;  %s30_s13 = int_to_ptr.vmem [resolvable:$true] %s29_s13  ;;  %s267_s15 = int_to_ptr.vmem [resolvable:$true] %s16_s15 }
   0x4   :  { %s147_s18 = scalar_lea.hbm %s329_s1, 16 }
   0x5   :  { %p148_p0 = scmp.ne.s32.totalorder %s329_s1, %s147_s18  ;;  %p151_p1 = scmp.lt.u32.totalorder %s147_s18, %s329_s1 }
   0x7   :  { %p153_p2 = pnand %p151_p1, %p148_p0 }
   0x9   :  { %156 = shalt.err (!%p153_p2)
}
   0xa   :  { %s157_s23 = scalar_lea.vmem %s30_s13, 16  ;;  %s161_s24 = scalar_lea.vmem %s30_s13, 32 }
   0xb   :  { %p158_p3 = scmp.ne.s32.totalorder %s30_s13, %s157_s23  ;;  %p162_p4 = scmp.lt.s32.totalorder %s30_s13, %s30_s13 }
   0xc   :  { %p163_p5 = scmp.lt.s32.totalorder %s161_s24, %s157_s23 }
   0xe   :  { %p164_p6 = por %p163_p5, %p162_p4 }
  0x10   :  { %p165_p7 = pnand %p164_p6, %p158_p3 }
  0x12   :  { %168 = shalt.err (!%p165_p7)
}
  0x13   :  { %32 = dma.hbm_to_vmem [thread:$0]  %s329_s1, 16, %s30_s13, [#allocation6]  }
  0x14   :  { %s169_s29 = scalar_lea.hbm %s328_s0, 256 }
  0x15   :  { %p170_p8 = scmp.ne.s32.totalorder %s328_s0, %s169_s29  ;;  %p173_p9 = scmp.lt.u32.totalorder %s169_s29, %s328_s0 }
  0x17   :  { %p175_p10 = pnand %p173_p9, %p170_p8 }
  0x19   :  { %178 = shalt.err (!%p175_p10)
}
  0x1a   :  { %s179_s7 = scalar_lea.vmem %s267_s15, 256  ;;  %p184_p12 = scmp.lt.s32.totalorder %s267_s15, %s267_s15 }
  0x1b   :  { %p180_p11 = scmp.ne.s32.totalorder %s267_s15, %s179_s7  ;;  %p185_p13 = scmp.lt.s32.totalorder %s179_s7, %s179_s7 }
  0x1d   :  { %p186_p0 = por %p185_p13, %p184_p12 }
  0x1f   :  { %p187_p1 = pnand %p186_p0, %p180_p11 }
  0x21   :  { %190 = shalt.err (!%p187_p1)
}
  0x22   :  { %s243_s1 = smov 128   ;;  %s244_s8 = smov 8  }
  0x23   :  { %22 = dma.hbm_to_vmem [thread:$0]  %s328_s0, 256, %s267_s15, [#allocation3], %s243_s1, %s243_s1, %s244_s8  }
  0x24   :  { %s245_s11 = smov [#allocation7]   ;;  %s191_s16 = scalar_lea.hbm %s330_s2, 16 }
  0x25   :  { %s39_s12 = sshll.u32 %s245_s11, 4  ;;  %p192_p2 = scmp.ne.s32.totalorder %s330_s2, %s191_s16  ;;  %s40_s12 = int_to_ptr.vmem [resolvable:$true] %s39_s12 }
  0x26   :  { %p195_p3 = scmp.lt.u32.totalorder %s191_s16, %s330_s2 }
  0x28   :  { %p197_p4 = pnand %p195_p3, %p192_p2 }
  0x2a   :  { %200 = shalt.err (!%p197_p4)
}
  0x2b   :  { %s201_s21 = scalar_lea.vmem %s40_s12, 16  ;;  %s205_s0 = scalar_lea.vmem %s40_s12, 32 }
  0x2c   :  { %p202_p5 = scmp.ne.s32.totalorder %s40_s12, %s201_s21  ;;  %p206_p6 = scmp.lt.s32.totalorder %s40_s12, %s40_s12 }
  0x2d   :  { %p207_p7 = scmp.lt.s32.totalorder %s205_s0, %s201_s21 }
  0x2f   :  { %p208_p8 = por %p207_p7, %p206_p6 }
  0x31   :  { %p209_p9 = pnand %p208_p8, %p202_p5 }
  0x33   :  { %212 = shalt.err (!%p209_p9)
}
  0x34   :  { %42 = dma.hbm_to_vmem [thread:$0]  %s330_s2, 16, %s40_s12, [#allocation6]  }
  0x35   :  { %235 = dma.done.wait [#allocation3], 256  }
  0x36   :  { %236 = vsyncadd [#allocation3], 4294967040 }
  0x37   :  { %237 = dma.done.wait [#allocation6], 32  }
  0x38   :  { %238 = vsyncadd [#allocation6], 4294967264  ;;  %v52_v0 = vld [vmem:[#allocation2] sm:$0xff]  ;;  %v53_v1 = vld [vmem:[#allocation2 + $0x8] sm:$0xff]  ;;  %s246_s2 = smov [#allocation8]  }
  0x39   :  { %54 = vadd.xlane.f32.xlu0 %v52_v0  ;;  %v131_v27 = vld [vmem:[#allocation5] ss:$0 sm:$0xff]  ;;  %v132_v29 = vld [vmem:[#allocation7] ss:$0 sm:$0xff]  ;;  %s118_s23 = sshll.u32 %s246_s2, 4  ;;  %s119_s23 = int_to_ptr.vmem [resolvable:$true] %s118_s23 }
  0x3a   :  { %s213_s24 = scalar_lea.vmem %s119_s23, 256  ;;  %p218_p11 = scmp.lt.s32.totalorder %s119_s23, %s119_s23 }
  0x3b   :  { %p214_p10 = scmp.ne.s32.totalorder %s119_s23, %s213_s24  ;;  %p219_p12 = scmp.lt.s32.totalorder %s213_s24, %s213_s24 }
  0x3d   :  { %56 = vadd.xlane.f32.xlu0 %v53_v1  ;;  %p220_p13 = por %p219_p12, %p218_p11 }
  0x3f   :  { %p221_p0 = pnand %p220_p13, %p214_p10 }
  0xc6   :  { %v55_v2 = vpop.xlane.xlu0 %54 }
  0xc7   :  { %v59_v3 = vmul.f32 0.0078125, %v55_v2 }
  0xc9   :  { %v61_v4 = vsub.f32 %v52_v0, %v59_v3 }
  0xca   :  { %v57_v5 = vpop.xlane.xlu0 %56 }
  0xcb   :  { %v60_v6 = vmul.f32 0.0078125, %v57_v5  ;;  %v63_v7 = vmul.f32 %v61_v4, %v61_v4 }
  0xcd   :  { %v62_v8 = vsub.f32 %v53_v1, %v60_v6  ;;  %65 = vadd.xlane.f32.xlu1 %v63_v7 }
  0xcf   :  { %v64_v9 = vmul.f32 %v62_v8, %v62_v8 }
  0xd1   :  { %67 = vadd.xlane.f32.xlu1 %v64_v9 }
 0x15a   :  { %v66_v10 = vpop.xlane.xlu1 %65 }
 0x15b   :  { %v69_v11 = vmul.f32 0.007874016, %v66_v10 }
 0x15d   :  { %139 = vrsqrt.f32 %v69_v11  ;;  %vm73_vm0 = vcmp.eq.f32.partialorder %v69_v11, inf  ;;  %v76_v16 = vand.u32 2147483648, %v69_v11  ;;  %vm75_vm1 = vcmp.eq.f32.partialorder %v69_v11, 0.0 }
 0x15e   :  { %v68_v12 = vpop.xlane.xlu1 %67 }
 0x15f   :  { %v70_v13 = vmul.f32 0.007874016, %v68_v12 }
 0x161   :  { %141 = vrsqrt.f32 %v70_v13  ;;  %vm80_vm2 = vcmp.eq.f32.partialorder %v70_v13, inf  ;;  %v83_v22 = vand.u32 2147483648, %v70_v13  ;;  %vm82_vm3 = vcmp.eq.f32.partialorder %v70_v13, 0.0 }
 0x167   :  { %v140_v14 = vpop.eup %139 }
 0x168   :  { %v72_v15 = vmul.f32 %v140_v14, %v69_v11 }
 0x16a   :  { %v74_v17 = vsel %vm73_vm0, %v69_v11, %v72_v15 }
 0x16b   :  { %v142_v18 = vpop.eup %141  ;;  %v77_v19 = vsel %vm75_vm1, %v76_v16, %v74_v17 }
 0x16c   :  { %v79_v20 = vmul.f32 %v142_v18, %v70_v13  ;;  %v85_v21 = vadd.f32 1e-06, %v77_v19 }
 0x16e   :  { %v81_v23 = vsel %vm80_vm2, %v70_v13, %v79_v20  ;;  %143 = vrcp.f32 %v85_v21 }
 0x16f   :  { %v84_v24 = vsel %vm82_vm3, %v83_v22, %v81_v23 }
 0x170   :  { %v86_v25 = vadd.f32 1e-06, %v84_v24 }
 0x172   :  { %145 = vrcp.f32 %v86_v25 }
 0x178   :  { %v144_v26 = vpop.eup %143 }
 0x179   :  { %v93_v28 = vmul.f32 %v144_v26, %v61_v4 }
 0x17b   :  { %v101_v30 = vmul.f32 %v131_v27, %v93_v28 }
 0x17c   :  { %v146_v31 = vpop.eup %145 }
 0x17d   :  { %v94_v32 = vmul.f32 %v146_v31, %v62_v8  ;;  %v109_v33 = vadd.f32 %v132_v29, %v101_v30 }
 0x17f   :  { %v102_v34 = vmul.f32 %v131_v27, %v94_v32  ;;  %111 = vst [vmem:[#allocation8] sm:$0xff] %v109_v33 }
 0x181   :  { %v110_v35 = vadd.f32 %v132_v29, %v102_v34 }
 0x183   :  { %112 = vst [vmem:[#allocation8 + $0x8] sm:$0xff] %v110_v35 }
 0x184   :  { %224 = shalt.err (!%p221_p0)
}
 0x185   :  { %s225_s27 = scalar_lea.hbm %s331_s3, 256 }
 0x186   :  { %p226_p1 = scmp.ne.s32.totalorder %s331_s3, %s225_s27  ;;  %p229_p2 = scmp.lt.u32.totalorder %s225_s27, %s331_s3 }
 0x188   :  { %p231_p3 = pnand %p229_p2, %p226_p1 }
 0x18a   :  { %234 = shalt.err (!%p231_p3)
}
 0x18b   :  { %124 = dma.vmem_to_hbm [thread:$0]  %s119_s23, 256, %s331_s3, [#allocation4], %s243_s1, %s243_s1, %s244_s8  }
 0x18c   :  { %239 = dma.done.wait [#allocation4], 256  }
 0x18d   :  { %240 = vsyncadd [#allocation4], 4294967040 }
 0x18e   :  { %128 = vsyncpa [#allocation3], 1 }
 0x18f   :  { %129 = vsyncpa [#allocation6], 1 }
 0x190   :  { %130 = vsyncpa [#allocation4], 1 }

</bundles_post_ra>
